<compile_context>
chip_gen: v7x
topology: tpu7x:2x2x1
jax: 0.10.0
libtpu: 0.0.40
codegen_flags: <defaults>
</compile_context>

<pallas_src>
from functools import partial

import jax
import jax.numpy as jnp
from jax.experimental import pallas as pl
from jax.experimental.pallas import tpu as pltpu

NEG_SLOPE = 0.01
HIDDEN_PAD = 128          # every layer's in/out dim is zero-padded to 128 lanes


def _round_up(x, m):
    return ((x + m - 1) // m) * m


def _chip_config():
    """Static per-generation tiling / VMEM / epilogue-dtype choices."""
    kind = ""
    try:
        kind = jax.devices()[0].device_kind.lower()
    except Exception:
        pass
    if "v5" in kind:
        # v5e: no bf16 VPU -> f32 epilogue; 128 MiB physical VMEM.
        return dict(act_dtype=jnp.float32, vmem_limit=64 * 1024 * 1024,
                    max_tile=8192, min_grid_steps=1)
    if "v6" in kind:
        return dict(act_dtype=jnp.bfloat16, vmem_limit=64 * 1024 * 1024,
                    max_tile=8192, min_grid_steps=1)
    if "v7" in kind or "tpu7" in kind:
        # v7x: 64 MiB VMEM per TC, 2 TCs per chip -> keep >=2 grid steps.
        return dict(act_dtype=jnp.bfloat16, vmem_limit=48 * 1024 * 1024,
                    max_tile=4096, min_grid_steps=2)
    # Unknown generation: conservative defaults.
    return dict(act_dtype=jnp.float32, vmem_limit=32 * 1024 * 1024,
                max_tile=2048, min_grid_steps=1)


def _choose_tile(batch, cfg):
    tile = min(cfg["max_tile"], _round_up(batch, 8))
    # Ensure >=2 grid steps on v7x so the ("parallel",) batch axis feeds both
    # TensorCores (only when the batch is actually splittable).
    while (cfg["min_grid_steps"] > 1
           and pl.cdiv(batch, tile) < cfg["min_grid_steps"]
           and tile > 8):
        tile = max(8, _round_up(tile // 2, 8))
    return tile


def _make_kernel(num_layers, in_features, out_features, act_dtype):
    def kernel(x_ref, w_ref, b_ref, o_ref):
        h = x_ref[...]                                    # (TB, in_features) f32
        for i in range(num_layers):                       # static unrolled
            k = in_features if i == 0 else HIDDEN_PAD
            w = w_ref[i, :k, :]                           # (k, 128) bf16, resident
            acc = jnp.dot(h.astype(jnp.bfloat16), w,
                          preferred_element_type=jnp.float32)   # MXU, f32 acc
            acc = acc + b_ref[i:i + 1, :]                 # f32 bias add
            if i < num_layers - 1:
                a = acc.astype(act_dtype)                 # bf16 epilogue on v6e/v7x
                h = jnp.maximum(a, NEG_SLOPE * a)         # LeakyReLU: vmul+vmax
            else:
                h = acc
        o_ref[...] = h[:, :out_features].astype(o_ref.dtype)

    return kernel


@partial(jax.jit, static_argnames=("out_features",))
def mlp_forward(x, w_slab, b_slab, *, out_features):
    """x: (B, in_features) f32; w_slab: (L,128,128) bf16; b_slab: (L,128) f32."""
    batch, in_features = x.shape
    num_layers = w_slab.shape[0]
    cfg = _chip_config()
    tile_b = _choose_tile(batch, cfg)
    grid = (pl.cdiv(batch, tile_b),)   # partial last block handled by Pallas

    kernel = _make_kernel(num_layers, in_features, out_features, cfg["act_dtype"])

    flops = 2 * batch * (in_features * HIDDEN_PAD
                         + (num_layers - 1) * HIDDEN_PAD * HIDDEN_PAD)
    bytes_accessed = (batch * in_features * 4 + batch * out_features * 4
                      + w_slab.size * 2 + b_slab.size * 4)

    return pl.pallas_call(
        kernel,
        out_shape=jax.ShapeDtypeStruct((batch, out_features), jnp.float32),
        grid=grid,
        in_specs=[
            pl.BlockSpec((tile_b, in_features), lambda i: (i, 0)),
            pl.BlockSpec(w_slab.shape, lambda i: (0, 0, 0)),   # weights resident
            pl.BlockSpec(b_slab.shape, lambda i: (0, 0)),      # biases resident
        ],
        out_specs=pl.BlockSpec((tile_b, out_features), lambda i: (i, 0)),
        compiler_params=pltpu.CompilerParams(
            dimension_semantics=("parallel",),     # megacore batch split on v7x
            vmem_limit_bytes=cfg["vmem_limit"],
        ),
        cost_estimate=pl.CostEstimate(
            flops=flops, transcendentals=0, bytes_accessed=bytes_accessed),
    )(x, w_slab, b_slab)


def init_params(key, input_features=8, num_hidden_layers=2, output_features=4):
    """PyTorch-Linear-style init (uniform +/- 1/sqrt(fan_in)), f32 params."""
    dims = [input_features, 32, 64, 128]
    for _ in range(num_hidden_layers):
        dims.append(128)
    dims.append(output_features)

    params = []
    for i in range(len(dims) - 1):
        fan_in, fan_out = dims[i], dims[i + 1]
        key, kw, kb = jax.random.split(key, 3)
        bound = 1.0 / jnp.sqrt(fan_in)
        w = jax.random.uniform(kw, (fan_in, fan_out), jnp.float32, -bound, bound)
        b = jax.random.uniform(kb, (fan_out,), jnp.float32, -bound, bound)
        params.append((w, b))
    return params


def pack_params(params):
    """One-time packing: bf16 weight slab + f32 bias slab, zero-padded to 128."""
    num_layers = len(params)
    w_slab = jnp.zeros((num_layers, HIDDEN_PAD, HIDDEN_PAD), jnp.bfloat16)
    b_slab = jnp.zeros((num_layers, HIDDEN_PAD), jnp.float32)
    for i, (w, b) in enumerate(params):
        fi, fo = w.shape
        w_slab = w_slab.at[i, :fi, :fo].set(w.astype(jnp.bfloat16))
        b_slab = b_slab.at[i, :fo].set(b.astype(jnp.float32))
    return w_slab, b_slab


def mlp_reference(x, params, *, matmul_dtype=jnp.float32, act_dtype=jnp.float32):
    """Reference with controllable numerics (f32 = PyTorch semantics)."""
    h = x
    n = len(params)
    for i, (w, b) in enumerate(params):
        acc = jnp.dot(h.astype(matmul_dtype), w.astype(matmul_dtype),
                      preferred_element_type=jnp.float32) + b.astype(jnp.float32)
        if i < n - 1:
            a = acc.astype(act_dtype)
            h = jnp.maximum(a, NEG_SLOPE * a)
        else:
            h = acc
    return h.astype(jnp.float32)


if __name__ == "__main__":
    key = jax.random.PRNGKey(0)
    k_params, k_x = jax.random.split(key)

    input_features = 8
    output_features = 4
    batch = 8

    params = init_params(k_params, input_features=input_features,
                         num_hidden_layers=2, output_features=output_features)
    w_slab, b_slab = pack_params(params)
    x = jax.random.normal(k_x, (batch, input_features), dtype=jnp.float32)

    out = mlp_forward(x, w_slab, b_slab, out_features=output_features)
    out = jax.block_until_ready(out)
    assert out.shape == (batch, output_features)

    # Tight check against a reference that mirrors the kernel numerics
    # (bf16 operands, f32 accumulation, chip-dependent activation dtype);
    # loose check against pure-f32 PyTorch semantics.
    act_dtype = _chip_config()["act_dtype"]
    ref_match = mlp_reference(x, params, matmul_dtype=jnp.bfloat16,
                              act_dtype=act_dtype)
    ref_f32 = mlp_reference(x, params)
    assert jnp.allclose(out, ref_match, atol=2e-3, rtol=2e-2), \
        f"mismatch vs bf16 reference: {jnp.max(jnp.abs(out - ref_match))}"
    assert jnp.allclose(out, ref_f32, atol=5e-2, rtol=5e-2), \
        f"mismatch vs f32 reference: {jnp.max(jnp.abs(out - ref_f32))}"

    print("KERNEL_OK")
</pallas_src>

<mosaic_0001>
module attributes {stable_mosaic.version = 11 : i64} {
  func.func @kernel(%arg0: i32, %arg1: memref<8x8xf32, #tpu.memory_space<vmem>>, %arg2: memref<6x128x128xbf16, #tpu.memory_space<vmem>>, %arg3: memref<6x128xf32, #tpu.memory_space<vmem>>, %arg4: memref<8x4xf32, #tpu.memory_space<vmem>>) attributes {dimension_semantics = [#tpu.dimension_semantics<parallel>], iteration_bounds = array<i64: 1>, scalar_prefetch = 0 : i64, scratch_operands = 0 : i64, tpu.core_type = #tpu.core_type<tc>, window_params = [{transform_indices = @transform_0, window_bounds = array<i64: 8, 8>}, {pipeline_mode = #tpu.pipeline_mode<synchronous>, transform_indices = @transform_1, window_bounds = array<i64: 6, 128, 128>}, {pipeline_mode = #tpu.pipeline_mode<synchronous>, transform_indices = @transform_2, window_bounds = array<i64: 6, 128>}, {transform_indices = @transform_3, window_bounds = array<i64: 8, 4>}]} {
    %c0 = arith.constant 0 : index
    %c0_0 = arith.constant 0 : index
    %0 = vector.load %arg1[%c0, %c0_0] : memref<8x8xf32, #tpu.memory_space<vmem>>, vector<8x8xf32>
    %c0_1 = arith.constant 0 : index
    %c0_2 = arith.constant 0 : index
    %c0_3 = arith.constant 0 : index
    %1 = vector.load %arg2[%c0_1, %c0_2, %c0_3] : memref<6x128x128xbf16, #tpu.memory_space<vmem>>, vector<1x8x128xbf16>
    %2 = vector.shape_cast %1 : vector<1x8x128xbf16> to vector<8x128xbf16>
    %3 = arith.truncf %0 : vector<8x8xf32> to vector<8x8xbf16>
    %cst = arith.constant dense<0.000000e+00> : vector<8x128xf32>
    %4 = tpu.matmul %3, %2, %cst {dimension_numbers = #tpu.dot_dimension_numbers<[1], [0], [0], [1], [0, 0, 1, 1], [], []>} : vector<8x8xbf16>, vector<8x128xbf16>, vector<8x128xf32> -> vector<8x128xf32>
    %c0_4 = arith.constant 0 : index
    %c0_5 = arith.constant 0 : index
    %5 = vector.load %arg3[%c0_4, %c0_5] : memref<6x128xf32, #tpu.memory_space<vmem>>, vector<1x128xf32>
    %6 = vector.broadcast %5 : vector<1x128xf32> to vector<8x128xf32>
    %7 = arith.addf %4, %6 : vector<8x128xf32>
    %cst_6 = arith.constant 0.00999999977 : f32
    %8 = vector.broadcast %cst_6 : f32 to vector<8x128xf32>
    %9 = arith.mulf %8, %7 : vector<8x128xf32>
    %10 = arith.maximumf %7, %9 : vector<8x128xf32>
    %c1 = arith.constant 1 : index
    %c0_7 = arith.constant 0 : index
    %c0_8 = arith.constant 0 : index
    %11 = vector.load %arg2[%c1, %c0_7, %c0_8] : memref<6x128x128xbf16, #tpu.memory_space<vmem>>, vector<1x128x128xbf16>
    %12 = vector.shape_cast %11 : vector<1x128x128xbf16> to vector<128x128xbf16>
    %13 = arith.truncf %10 : vector<8x128xf32> to vector<8x128xbf16>
    %cst_9 = arith.constant dense<0.000000e+00> : vector<8x128xf32>
    %14 = tpu.matmul %13, %12, %cst_9 {dimension_numbers = #tpu.dot_dimension_numbers<[1], [0], [0], [1], [0, 0, 1, 1], [], []>} : vector<8x128xbf16>, vector<128x128xbf16>, vector<8x128xf32> -> vector<8x128xf32>
    %c1_10 = arith.constant 1 : index
    %c0_11 = arith.constant 0 : index
    %15 = vector.load %arg3[%c1_10, %c0_11] : memref<6x128xf32, #tpu.memory_space<vmem>>, vector<1x128xf32>
    %16 = vector.broadcast %15 : vector<1x128xf32> to vector<8x128xf32>
    %17 = arith.addf %14, %16 : vector<8x128xf32>
    %cst_12 = arith.constant 0.00999999977 : f32
    %18 = vector.broadcast %cst_12 : f32 to vector<8x128xf32>
    %19 = arith.mulf %18, %17 : vector<8x128xf32>
    %20 = arith.maximumf %17, %19 : vector<8x128xf32>
    %c2 = arith.constant 2 : index
    %c0_13 = arith.constant 0 : index
    %c0_14 = arith.constant 0 : index
    %21 = vector.load %arg2[%c2, %c0_13, %c0_14] : memref<6x128x128xbf16, #tpu.memory_space<vmem>>, vector<1x128x128xbf16>
    %22 = vector.shape_cast %21 : vector<1x128x128xbf16> to vector<128x128xbf16>
    %23 = arith.truncf %20 : vector<8x128xf32> to vector<8x128xbf16>
    %cst_15 = arith.constant dense<0.000000e+00> : vector<8x128xf32>
    %24 = tpu.matmul %23, %22, %cst_15 {dimension_numbers = #tpu.dot_dimension_numbers<[1], [0], [0], [1], [0, 0, 1, 1], [], []>} : vector<8x128xbf16>, vector<128x128xbf16>, vector<8x128xf32> -> vector<8x128xf32>
    %c2_16 = arith.constant 2 : index
    %c0_17 = arith.constant 0 : index
    %25 = vector.load %arg3[%c2_16, %c0_17] : memref<6x128xf32, #tpu.memory_space<vmem>>, vector<1x128xf32>
    %26 = vector.broadcast %25 : vector<1x128xf32> to vector<8x128xf32>
    %27 = arith.addf %24, %26 : vector<8x128xf32>
    %cst_18 = arith.constant 0.00999999977 : f32
    %28 = vector.broadcast %cst_18 : f32 to vector<8x128xf32>
    %29 = arith.mulf %28, %27 : vector<8x128xf32>
    %30 = arith.maximumf %27, %29 : vector<8x128xf32>
    %c3 = arith.constant 3 : index
    %c0_19 = arith.constant 0 : index
    %c0_20 = arith.constant 0 : index
    %31 = vector.load %arg2[%c3, %c0_19, %c0_20] : memref<6x128x128xbf16, #tpu.memory_space<vmem>>, vector<1x128x128xbf16>
    %32 = vector.shape_cast %31 : vector<1x128x128xbf16> to vector<128x128xbf16>
    %33 = arith.truncf %30 : vector<8x128xf32> to vector<8x128xbf16>
    %cst_21 = arith.constant dense<0.000000e+00> : vector<8x128xf32>
    %34 = tpu.matmul %33, %32, %cst_21 {dimension_numbers = #tpu.dot_dimension_numbers<[1], [0], [0], [1], [0, 0, 1, 1], [], []>} : vector<8x128xbf16>, vector<128x128xbf16>, vector<8x128xf32> -> vector<8x128xf32>
    %c3_22 = arith.constant 3 : index
    %c0_23 = arith.constant 0 : index
    %35 = vector.load %arg3[%c3_22, %c0_23] : memref<6x128xf32, #tpu.memory_space<vmem>>, vector<1x128xf32>
    %36 = vector.broadcast %35 : vector<1x128xf32> to vector<8x128xf32>
    %37 = arith.addf %34, %36 : vector<8x128xf32>
    %cst_24 = arith.constant 0.00999999977 : f32
    %38 = vector.broadcast %cst_24 : f32 to vector<8x128xf32>
    %39 = arith.mulf %38, %37 : vector<8x128xf32>
    %40 = arith.maximumf %37, %39 : vector<8x128xf32>
    %c4 = arith.constant 4 : index
    %c0_25 = arith.constant 0 : index
    %c0_26 = arith.constant 0 : index
    %41 = vector.load %arg2[%c4, %c0_25, %c0_26] : memref<6x128x128xbf16, #tpu.memory_space<vmem>>, vector<1x128x128xbf16>
    %42 = vector.shape_cast %41 : vector<1x128x128xbf16> to vector<128x128xbf16>
    %43 = arith.truncf %40 : vector<8x128xf32> to vector<8x128xbf16>
    %cst_27 = arith.constant dense<0.000000e+00> : vector<8x128xf32>
    %44 = tpu.matmul %43, %42, %cst_27 {dimension_numbers = #tpu.dot_dimension_numbers<[1], [0], [0], [1], [0, 0, 1, 1], [], []>} : vector<8x128xbf16>, vector<128x128xbf16>, vector<8x128xf32> -> vector<8x128xf32>
    %c4_28 = arith.constant 4 : index
    %c0_29 = arith.constant 0 : index
    %45 = vector.load %arg3[%c4_28, %c0_29] : memref<6x128xf32, #tpu.memory_space<vmem>>, vector<1x128xf32>
    %46 = vector.broadcast %45 : vector<1x128xf32> to vector<8x128xf32>
    %47 = arith.addf %44, %46 : vector<8x128xf32>
    %cst_30 = arith.constant 0.00999999977 : f32
    %48 = vector.broadcast %cst_30 : f32 to vector<8x128xf32>
    %49 = arith.mulf %48, %47 : vector<8x128xf32>
    %50 = arith.maximumf %47, %49 : vector<8x128xf32>
    %c5 = arith.constant 5 : index
    %c0_31 = arith.constant 0 : index
    %c0_32 = arith.constant 0 : index
    %51 = vector.load %arg2[%c5, %c0_31, %c0_32] : memref<6x128x128xbf16, #tpu.memory_space<vmem>>, vector<1x128x128xbf16>
    %52 = vector.shape_cast %51 : vector<1x128x128xbf16> to vector<128x128xbf16>
    %53 = arith.truncf %50 : vector<8x128xf32> to vector<8x128xbf16>
    %cst_33 = arith.constant dense<0.000000e+00> : vector<8x128xf32>
    %54 = tpu.matmul %53, %52, %cst_33 {dimension_numbers = #tpu.dot_dimension_numbers<[1], [0], [0], [1], [0, 0, 1, 1], [], []>} : vector<8x128xbf16>, vector<128x128xbf16>, vector<8x128xf32> -> vector<8x128xf32>
    %c5_34 = arith.constant 5 : index
    %c0_35 = arith.constant 0 : index
    %55 = vector.load %arg3[%c5_34, %c0_35] : memref<6x128xf32, #tpu.memory_space<vmem>>, vector<1x128xf32>
    %56 = vector.broadcast %55 : vector<1x128xf32> to vector<8x128xf32>
    %57 = arith.addf %54, %56 : vector<8x128xf32>
    %58 = vector.extract_strided_slice %57 {offsets = [0, 0], sizes = [8, 4], strides = [1, 1]} : vector<8x128xf32> to vector<8x4xf32>
    %c0_36 = arith.constant 0 : index
    %c0_37 = arith.constant 0 : index
    %59 = vector.load %arg4[%c0_36, %c0_37] : memref<8x4xf32, #tpu.memory_space<vmem>>, vector<8x4xf32>
    tpu.vector_store %arg4[%c0_36, %c0_37], %58 {strides = array<i32>} : memref<8x4xf32, #tpu.memory_space<vmem>>, vector<8x4xf32>,
    return
  }
  func.func @transform_0(%arg0: i32) -> (i32, i32) {
    %c0_i32 = arith.constant 0 : i32
    %c0_i32_0 = arith.constant 0 : i32
    return %arg0, %c0_i32 : i32, i32
  }
  func.func @transform_1(%arg0: i32) -> (i32, i32, i32) {
    %c0_i32 = arith.constant 0 : i32
    %c0_i32_0 = arith.constant 0 : i32
    %c0_i32_1 = arith.constant 0 : i32
    %c0_i32_2 = arith.constant 0 : i32
    return %c0_i32, %c0_i32_0, %c0_i32_1 : i32, i32, i32
  }
  func.func @transform_2(%arg0: i32) -> (i32, i32) {
    %c0_i32 = arith.constant 0 : i32
    %c0_i32_0 = arith.constant 0 : i32
    %c0_i32_1 = arith.constant 0 : i32
    return %c0_i32, %c0_i32_0 : i32, i32
  }
  func.func @transform_3(%arg0: i32) -> (i32, i32) {
    %c0_i32 = arith.constant 0 : i32
    %c0_i32_0 = arith.constant 0 : i32
    return %arg0, %c0_i32 : i32, i32
  }
}

</mosaic_0001>

<bundles_post_ra>
// kernel: mlp_forward.1
= control target key start
LH: loop header
LB: loop body
LE: loop exit
PB: predicated region body
PF: predicated region fallthrough
CT: control target
= control target key end

     0   :  { %8 = vsyncpa [#allocation3], 0  ;;  %s1117_s0 = inlined_call_operand.hbm [shape: f32[8,8], index: 0, kind: input, shape index: {}]   ;;  %s1118_s1 = inlined_call_operand.hbm [shape: bf16[6,128,128], index: 1, kind: input, shape index: {}]   ;;  %s1119_s2 = inlined_call_operand.hbm [shape: f32[6,128], index: 2, kind: input, shape index: {}]   ;;  %s1120_s3 = inlined_call_operand.vmem [shape: f32[8,4], index: 3, kind: output, shape index: {}]  }
   0x1   :  { %9 = vsyncpa [#allocation5], 0  ;;  %s998_s12 = smov [#allocation4]   ;;  %s928_s16 = scalar_lea.hbm %s1118_s1, 6144 }
   0x2   :  { %s25_s13 = sshll.u32 %s998_s12, 4  ;;  %p929_p0 = scmp.ne.s32.totalorder %s1118_s1, %s928_s16  ;;  %s26_s13 = int_to_ptr.vmem [resolvable:$true] %s25_s13 }
   0x3   :  { %p932_p1 = scmp.lt.u32.totalorder %s928_s16, %s1118_s1 }
   0x5   :  { %p934_p2 = pnand %p932_p1, %p929_p0 }
   0x7   :  { %937 = shalt.err (!%p934_p2)
}
   0x8   :  { %s938_s21 = scalar_lea.vmem %s26_s13, 6144  ;;  %p943_p4 = scmp.lt.s32.totalorder %s26_s13, %s26_s13 }
   0x9   :  { %p939_p3 = scmp.ne.s32.totalorder %s26_s13, %s938_s21  ;;  %p944_p5 = scmp.lt.s32.totalorder %s938_s21, %s938_s21 }
   0xb   :  { %p945_p6 = por %p944_p5, %p943_p4 }
   0xd   :  { %p946_p7 = pnand %p945_p6, %p939_p3 }
   0xf   :  { %949 = shalt.err (!%p946_p7)
}
  0x10   :  { %s999_s22 = smov 64   ;;  %s1000_s23 = smov 4  }
  0x11   :  { %31 = dma.hbm_to_vmem [thread:$0]  %s1118_s1, 6144, %s26_s13, [#allocation5], %s999_s22, %s999_s22, %s1000_s23  }
  0x12   :  { %s1001_s26 = smov [#allocation2]   ;;  %s1002_s28 = smov [#allocation6]  }
  0x13   :  { %s16_s27 = sshll.u32 %s1001_s26, 4  ;;  %s38_s29 = sshll.u32 %s1002_s28, 4  ;;  %s17_s27 = int_to_ptr.vmem [resolvable:$true] %s16_s27  ;;  %s39_s29 = int_to_ptr.vmem [resolvable:$true] %s38_s29 }
  0x14   :  { %s950_s5 = scalar_lea.hbm %s1117_s0, 128 }
  0x15   :  { %p951_p8 = scmp.ne.s32.totalorder %s1117_s0, %s950_s5  ;;  %p954_p9 = scmp.lt.u32.totalorder %s950_s5, %s1117_s0 }
  0x17   :  { %p956_p10 = pnand %p954_p9, %p951_p8 }
  0x19   :  { %959 = shalt.err (!%p956_p10)
}
  0x1a   :  { %s960_s1 = scalar_lea.vmem %s17_s27, 128  ;;  %p965_p12 = scmp.lt.s32.totalorder %s17_s27, %s17_s27 }
  0x1b   :  { %p961_p11 = scmp.ne.s32.totalorder %s17_s27, %s960_s1  ;;  %p966_p13 = scmp.lt.s32.totalorder %s960_s1, %s960_s1 }
  0x1d   :  { %p967_p0 = por %p966_p13, %p965_p12 }
  0x1f   :  { %p968_p1 = pnand %p967_p0, %p961_p11 }
  0x21   :  { %971 = shalt.err (!%p968_p1)
}
  0x22   :  { %19 = dma.hbm_to_vmem [thread:$0]  %s1117_s0, 128, %s17_s27, [#allocation3]  }
  0x23   :  { %s972_s14 = scalar_lea.hbm %s1119_s2, 128 }
  0x24   :  { %p973_p2 = scmp.ne.s32.totalorder %s1119_s2, %s972_s14  ;;  %p976_p3 = scmp.lt.u32.totalorder %s972_s14, %s1119_s2 }
  0x26   :  { %p978_p4 = pnand %p976_p3, %p973_p2 }
  0x28   :  { %981 = shalt.err (!%p978_p4)
}
  0x29   :  { %s982_s19 = scalar_lea.vmem %s39_s29, 128  ;;  %p987_p6 = scmp.lt.s32.totalorder %s39_s29, %s39_s29 }
  0x2a   :  { %p983_p5 = scmp.ne.s32.totalorder %s39_s29, %s982_s19  ;;  %p988_p7 = scmp.lt.s32.totalorder %s982_s19, %s982_s19 }
  0x2c   :  { %p989_p8 = por %p988_p7, %p987_p6 }
  0x2e   :  { %p990_p9 = pnand %p989_p8, %p983_p5 }
  0x30   :  { %993 = shalt.err (!%p990_p9)
}
  0x31   :  { %41 = dma.hbm_to_vmem [thread:$0]  %s1119_s2, 128, %s39_s29, [#allocation5]  }
  0x32   :  { %994 = dma.done.wait [#allocation3], 128  }
  0x33   :  { %995 = vsyncadd [#allocation3], 4294967168 }
  0x34   :  { %996 = dma.done.wait [#allocation5], 6272  }
  0x35   :  { %997 = vsyncadd [#allocation5], 4294961024  ;;  %v1003_v0 = vmov 0.0   ;;  %vm1004_vm0 = vmmov 0   ;;  %vm64_vm1 = vcmask 1043456   ;;  %v52_v2 = vld [vmem:[#allocation2] sm:$0xff] }
  0x36   :  { %775 = vmatprep.subr.bf16.mxu0 %v1003_v0  ;;  %777 = vmatprep.mubr.msk.bf16.mxu0 %vm1004_vm0, %v1003_v0  ;;  %v53_v1 = vld [vmem:[#allocation4] sm:$0xf]  ;;  %v54_v4 = vpack.c.bf16 %v52_v2, %v52_v2  ;;  %vm60_vm2 = vcmask 64512   ;;  %v889_v6 = vld [vmem:[#allocation4 + $0x48] sm:$0xff]   ;;  %v890_v7 = vld [vmem:[#allocation4 + $0x50] sm:$0xff]   ;;  %vm673_vm3 = vcmask 31744  }
  0x37   :  { %781 = vmatprep.subr.bf16.mxu1 %v1003_v0  ;;  %797 = vmatprep.mubr.msk.bf16.mxu1 %vm1004_vm0, %v1003_v0  ;;  %v66_v3 = vsel %vm64_vm1, %v53_v1, 0  ;;  %v888_v5 = vld [vmem:[#allocation4 + $0x40] sm:$0xff]   ;;  %v891_v8 = vld [vmem:[#allocation4 + $0x58] sm:$0xff]   ;;  %v893_v10 = vld [vmem:[#allocation4 + $0x68] sm:$0xff]  }
  0x38   :  { %776 = vmatpush3.bf16.msra.mxu0 %v66_v3  ;;  %782 = vmatpush3.bf16.msra.mxu1 %v888_v5  ;;  %v892_v9 = vld [vmem:[#allocation4 + $0x60] sm:$0xff]   ;;  %v894_v11 = vld [vmem:[#allocation4 + $0x70] sm:$0xff]   ;;  %v895_v12 = vld [vmem:[#allocation4 + $0x78] sm:$0xff]  }
  0x39   :  { %801 = vmatprep.subr.bf16.mxu0 %v1003_v0  ;;  %783 = vmatprep.subr.bf16.mxu1 %v1003_v0  ;;  %v896_v13 = vld [vmem:[#allocation4 + $0x80] sm:$0xff]   ;;  %v897_v14 = vld [vmem:[#allocation4 + $0x88] sm:$0xff]   ;;  %v898_v15 = vld [vmem:[#allocation4 + $0x90] sm:$0xff]  }
  0x3a   :  { %v899_v16 = vld [vmem:[#allocation4 + $0x98] sm:$0xff]   ;;  %v900_v17 = vld [vmem:[#allocation4 + $0xa0] sm:$0xff]   ;;  %v901_v18 = vld [vmem:[#allocation4 + $0xa8] sm:$0xff]  }
  0x3b   :  { %778 = vmatmul.mubr.msk.bf16.vlgmr.msra.gmra.mrb[0].mxu0 %vm60_vm2, %v54_v4  ;;  %v681_v19 = vld [vmem:[#allocation6] ss:$0 sm:$0xff]  ;;  %v902_v28 = vld [vmem:[#allocation4 + $0xb0] sm:$0xff]   ;;  %v903_v29 = vld [vmem:[#allocation4 + $0xb8] sm:$0xff]  }
  0x3c   :  { %817 = vmatprep.mubr.msk.bf16.mxu0 %vm1004_vm0, %v1003_v0  ;;  %784 = vmatpush3.bf16.msra.mxu1 %v889_v6  ;;  %v904_v30 = vld [vmem:[#allocation4 + $0xc0] sm:$0xff]   ;;  %v905_v31 = vld [vmem:[#allocation4 + $0xc8] sm:$0xff]   ;;  %v906_v32 = vld [vmem:[#allocation4 + $0xd0] sm:$0xff]  }
  0x3d   :  { %785 = vmatprep.subr.bf16.mxu1 %v1003_v0  ;;  %802 = vmatpush3.bf16.msra.mxu0 %v896_v13  ;;  %v907_v33 = vld [vmem:[#allocation4 + $0xd8] sm:$0xff]   ;;  %v908_v34 = vld [vmem:[#allocation4 + $0xe0] sm:$0xff]   ;;  %v909_v35 = vld [vmem:[#allocation4 + $0xe8] sm:$0xff]  }
  0x3e   :  { %803 = vmatprep.subr.bf16.mxu0 %v1003_v0  ;;  %v683_v36 = vld [vmem:[#allocation6 + $0x1] ss:$0 sm:$0xff]  ;;  %v910_v45 = vld [vmem:[#allocation4 + $0xf0] sm:$0xff]   ;;  %v911_v46 = vld [vmem:[#allocation4 + $0xf8] sm:$0xff]  }
  0x3f   :  { %v912_v47 = vld [vmem:[#allocation4 + $0x100] sm:$0xff]   ;;  %v913_v48 = vld [vmem:[#allocation4 + $0x108] sm:$0xff]   ;;  %v914_v49 = vld [vmem:[#allocation4 + $0x110] sm:$0xff]  }
  0x40   :  { %786 = vmatpush3.bf16.msra.mxu1 %v890_v7  ;;  %v915_v50 = vld [vmem:[#allocation4 + $0x118] sm:$0xff]   ;;  %v916_v51 = vld [vmem:[#allocation4 + $0x120] sm:$0xff]   ;;  %v917_v52 = vld [vmem:[#allocation4 + $0x128] sm:$0xff]  }
  0x41   :  { %787 = vmatprep.subr.bf16.mxu1 %v1003_v0  ;;  %804 = vmatpush3.bf16.msra.mxu0 %v897_v14  ;;  %v692_v53 = vld [vmem:[#allocation6 + $0x2] ss:$0 sm:$0xff]  ;;  %v918_v62 = vld [vmem:[#allocation4 + $0x130] sm:$0xff]   ;;  %v919_v63 = vld [vmem:[#allocation4 + $0x138] sm:$0xff]  }
  0x42   :  { %805 = vmatprep.subr.bf16.mxu0 %v1003_v0  ;;  %v920_v1 = vld [vmem:[#allocation4 + $0x140] sm:$0xff]   ;;  %v921_v2 = vld [vmem:[#allocation4 + $0x148] sm:$0xff]   ;;  %v922_v3 = vld [vmem:[#allocation4 + $0x150] sm:$0xff]  }
  0x43   :  { %v923_v4 = vld [vmem:[#allocation4 + $0x158] sm:$0xff]   ;;  %v924_v5 = vld [vmem:[#allocation4 + $0x160] sm:$0xff]   ;;  %v925_v6 = vld [vmem:[#allocation4 + $0x168] sm:$0xff]  }
  0x44   :  { %788 = vmatpush3.bf16.msra.mxu1 %v891_v8  ;;  %v701_v7 = vld [vmem:[#allocation6 + $0x3] ss:$0 sm:$0xff] }
  0x45   :  { %789 = vmatprep.subr.bf16.mxu1 %v1003_v0  ;;  %806 = vmatpush3.bf16.msra.mxu0 %v898_v15 }
  0x46   :  { %807 = vmatprep.subr.bf16.mxu0 %v1003_v0 }
  0x48   :  { %790 = vmatpush3.bf16.msra.mxu1 %v892_v9 }
  0x49   :  { %791 = vmatprep.subr.bf16.mxu1 %v1003_v0  ;;  %808 = vmatpush3.bf16.msra.mxu0 %v899_v16  ;;  %v926_v16 = vld [vmem:[#allocation4 + $0x170] sm:$0xff]  }
  0x4a   :  { %809 = vmatprep.subr.bf16.mxu0 %v1003_v0 }
  0x4c   :  { %792 = vmatpush3.bf16.msra.mxu1 %v893_v10 }
  0x4d   :  { %793 = vmatprep.subr.bf16.mxu1 %v1003_v0  ;;  %810 = vmatpush3.bf16.msra.mxu0 %v900_v17  ;;  %v927_v17 = vld [vmem:[#allocation4 + $0x178] sm:$0xff]  }
  0x4e   :  { %811 = vmatprep.subr.bf16.mxu0 %v1003_v0 }
  0x50   :  { %794 = vmatpush3.bf16.msra.mxu1 %v894_v11 }
  0x51   :  { %795 = vmatprep.subr.bf16.mxu1 %v1003_v0  ;;  %812 = vmatpush3.bf16.msra.mxu0 %v901_v18  ;;  %v710_v18 = vld [vmem:[#allocation6 + $0x4] ss:$0 sm:$0xff] }
  0x52   :  { %813 = vmatprep.subr.bf16.mxu0 %v1003_v0 }
  0x54   :  { %796 = vmatpush3.bf16.msra.mxu1 %v895_v12 }
  0x55   :  { %821 = vmatprep.subr.bf16.mxu1 %v1003_v0  ;;  %814 = vmatpush3.bf16.msra.mxu0 %v902_v28 }
  0x56   :  { %815 = vmatprep.subr.bf16.mxu0 %v1003_v0 }
  0x59   :  { %816 = vmatpush3.bf16.msra.mxu0 %v903_v29 }
  0x5a   :  { %841 = vmatprep.subr.bf16.mxu0 %v1003_v0 }
 0x10e   :  { %v102_v20 = vpop.f32.mrb[0].mxu0 }
 0x10f   :  { %v103_v21 = vadd.f32 %v681_v19, %v102_v20  ;;  %v779_v22 = vpop.f32.mrb[1].mxu0 }
 0x110   :  { %v105_v23 = vpop.f32.mrb[2].mxu0 }
 0x111   :  { %v108_v24 = vmul.f32 0.01, %v103_v21  ;;  %v780_v25 = vpop.f32.mrb[3].mxu0 }
 0x113   :  { %v109_v26 = vmax.f32 %v103_v21, %v108_v24 }
 0x115   :  { %v127_v27 = vpack.c.bf16 %v109_v26, %v109_v26 }
 0x117   :  { %798 = vmatmul.mubr.bf16.vlgmr.msra.gmra.mrb[0].mxu1 %v127_v27  ;;  %v719_v27 = vld [vmem:[#allocation6 + $0x5] ss:$0 sm:$0xff] }
 0x118   :  { %837 = vmatprep.mubr.msk.bf16.mxu1 %vm1004_vm0, %v1003_v0  ;;  %822 = vmatpush3.bf16.msra.mxu1 %v904_v30 }
 0x119   :  { %823 = vmatprep.subr.bf16.mxu1 %v1003_v0 }
 0x11c   :  { %824 = vmatpush3.bf16.msra.mxu1 %v905_v31 }
 0x11d   :  { %825 = vmatprep.subr.bf16.mxu1 %v1003_v0 }
 0x120   :  { %826 = vmatpush3.bf16.msra.mxu1 %v906_v32 }
 0x121   :  { %827 = vmatprep.subr.bf16.mxu1 %v1003_v0 }
 0x124   :  { %828 = vmatpush3.bf16.msra.mxu1 %v907_v33 }
 0x125   :  { %829 = vmatprep.subr.bf16.mxu1 %v1003_v0 }
 0x128   :  { %830 = vmatpush3.bf16.msra.mxu1 %v908_v34 }
 0x129   :  { %831 = vmatprep.subr.bf16.mxu1 %v1003_v0 }
 0x12c   :  { %832 = vmatpush3.bf16.msra.mxu1 %v909_v35 }
 0x12d   :  { %833 = vmatprep.subr.bf16.mxu1 %v1003_v0 }
 0x130   :  { %834 = vmatpush3.bf16.msra.mxu1 %v910_v45 }
 0x131   :  { %835 = vmatprep.subr.bf16.mxu1 %v1003_v0 }
 0x134   :  { %836 = vmatpush3.bf16.msra.mxu1 %v911_v46 }
 0x135   :  { %861 = vmatprep.subr.bf16.mxu1 %v1003_v0 }
 0x1ea   :  { %v215_v37 = vpop.f32.mrb[0].mxu1 }
 0x1eb   :  { %v216_v38 = vadd.f32 %v683_v36, %v215_v37  ;;  %v799_v39 = vpop.f32.mrb[1].mxu1 }
 0x1ec   :  { %v218_v40 = vpop.f32.mrb[2].mxu1 }
 0x1ed   :  { %v221_v41 = vmul.f32 0.01, %v216_v38  ;;  %v800_v42 = vpop.f32.mrb[3].mxu1 }
 0x1ef   :  { %v222_v43 = vmax.f32 %v216_v38, %v221_v41 }
 0x1f1   :  { %v240_v44 = vpack.c.bf16 %v222_v43, %v222_v43 }
 0x1f3   :  { %818 = vmatmul.mubr.bf16.vlgmr.msra.gmra.mrb[4].mxu0 %v240_v44 }
 0x1f4   :  { %857 = vmatprep.mubr.msk.bf16.mxu0 %vm1004_vm0, %v1003_v0  ;;  %842 = vmatpush3.bf16.msra.mxu0 %v912_v47 }
 0x1f5   :  { %843 = vmatprep.subr.bf16.mxu0 %v1003_v0 }
 0x1f8   :  { %844 = vmatpush3.bf16.msra.mxu0 %v913_v48 }
 0x1f9   :  { %845 = vmatprep.subr.bf16.mxu0 %v1003_v0 }
 0x1fc   :  { %846 = vmatpush3.bf16.msra.mxu0 %v914_v49 }
 0x1fd   :  { %847 = vmatprep.subr.bf16.mxu0 %v1003_v0 }
 0x200   :  { %848 = vmatpush3.bf16.msra.mxu0 %v915_v50 }
 0x201   :  { %849 = vmatprep.subr.bf16.mxu0 %v1003_v0 }
 0x204   :  { %850 = vmatpush3.bf16.msra.mxu0 %v916_v51 }
 0x205   :  { %851 = vmatprep.subr.bf16.mxu0 %v1003_v0 }
 0x208   :  { %852 = vmatpush3.bf16.msra.mxu0 %v917_v52 }
 0x209   :  { %853 = vmatprep.subr.bf16.mxu0 %v1003_v0 }
 0x20c   :  { %854 = vmatpush3.bf16.msra.mxu0 %v918_v62 }
 0x20d   :  { %855 = vmatprep.subr.bf16.mxu0 %v1003_v0 }
 0x210   :  { %856 = vmatpush3.bf16.msra.mxu0 %v919_v63 }
 0x2c6   :  { %v328_v54 = vpop.f32.mrb[4].mxu0 }
 0x2c7   :  { %v329_v55 = vadd.f32 %v692_v53, %v328_v54  ;;  %v819_v56 = vpop.f32.mrb[5].mxu0 }
 0x2c8   :  { %v331_v57 = vpop.f32.mrb[6].mxu0 }
 0x2c9   :  { %v334_v58 = vmul.f32 0.01, %v329_v55  ;;  %v820_v59 = vpop.f32.mrb[7].mxu0 }
 0x2cb   :  { %v335_v60 = vmax.f32 %v329_v55, %v334_v58 }
 0x2cd   :  { %v353_v61 = vpack.c.bf16 %v335_v60, %v335_v60 }
 0x2cf   :  { %838 = vmatmul.mubr.bf16.vlgmr.msra.gmra.mrb[4].mxu1 %v353_v61 }
 0x2d0   :  { %877 = vmatprep.mubr.msk.bf16.mxu1 %vm1004_vm0, %v1003_v0  ;;  %862 = vmatpush3.bf16.msra.mxu1 %v920_v1 }
 0x2d1   :  { %863 = vmatprep.subr.bf16.mxu1 %v1003_v0 }
 0x2d4   :  { %864 = vmatpush3.bf16.msra.mxu1 %v921_v2 }
 0x2d5   :  { %865 = vmatprep.subr.bf16.mxu1 %v1003_v0 }
 0x2d8   :  { %866 = vmatpush3.bf16.msra.mxu1 %v922_v3 }
 0x2d9   :  { %867 = vmatprep.subr.bf16.mxu1 %v1003_v0 }
 0x2dc   :  { %868 = vmatpush3.bf16.msra.mxu1 %v923_v4 }
 0x2dd   :  { %869 = vmatprep.subr.bf16.mxu1 %v1003_v0 }
 0x2e0   :  { %870 = vmatpush3.bf16.msra.mxu1 %v924_v5 }
 0x2e1   :  { %871 = vmatprep.subr.bf16.mxu1 %v1003_v0 }
 0x2e4   :  { %872 = vmatpush3.bf16.msra.mxu1 %v925_v6 }
 0x2e5   :  { %873 = vmatprep.subr.bf16.mxu1 %v1003_v0 }
 0x2e8   :  { %874 = vmatpush3.bf16.msra.mxu1 %v926_v16 }
 0x2e9   :  { %875 = vmatprep.subr.bf16.mxu1 %v1003_v0 }
 0x2ec   :  { %876 = vmatpush3.bf16.msra.mxu1 %v927_v17 }
 0x3a2   :  { %v441_v8 = vpop.f32.mrb[4].mxu1 }
 0x3a3   :  { %v442_v9 = vadd.f32 %v701_v7, %v441_v8  ;;  %v839_v10 = vpop.f32.mrb[5].mxu1 }
 0x3a4   :  { %v444_v11 = vpop.f32.mrb[6].mxu1 }
 0x3a5   :  { %v447_v12 = vmul.f32 0.01, %v442_v9  ;;  %v840_v13 = vpop.f32.mrb[7].mxu1 }
 0x3a7   :  { %v448_v14 = vmax.f32 %v442_v9, %v447_v12 }
 0x3a9   :  { %v466_v15 = vpack.c.bf16 %v448_v14, %v448_v14 }
 0x3ab   :  { %858 = vmatmul.mubr.bf16.vlgmr.msra.gmra.mrb[8].mxu0 %v466_v15 }
 0x47e   :  { %v554_v19 = vpop.f32.mrb[8].mxu0 }
 0x47f   :  { %v555_v20 = vadd.f32 %v710_v18, %v554_v19  ;;  %v859_v21 = vpop.f32.mrb[9].mxu0 }
 0x480   :  { %v557_v22 = vpop.f32.mrb[10].mxu0 }
 0x481   :  { %v560_v23 = vmul.f32 0.01, %v555_v20  ;;  %v860_v24 = vpop.f32.mrb[11].mxu0 }
 0x483   :  { %v561_v25 = vmax.f32 %v555_v20, %v560_v23 }
 0x485   :  { %v579_v26 = vpack.c.bf16 %v561_v25, %v561_v25 }
 0x487   :  { %878 = vmatmul.mubr.bf16.vlgmr.msra.gmra.mrb[8].mxu1 %v579_v26 }
 0x55a   :  { %v667_v28 = vpop.f32.mrb[8].mxu1 }
 0x55b   :  { %v668_v29 = vadd.f32 %v719_v27, %v667_v28  ;;  %v879_v30 = vpop.f32.mrb[9].mxu1 }
 0x55c   :  { %v670_v31 = vpop.f32.mrb[10].mxu1 }
 0x55d   :  { %674 = vst.msk [vmem:[%s1120_s3] sm:$0xff] %vm673_vm3, %v668_v29  ;;  %v880_v0 = vpop.f32.mrb[11].mxu1 }
 0x55e   :  { %679 = vsyncpa [#allocation3], 1 }
 0x55f   :  { %680 = vsyncpa [#allocation5], 1 }

</bundles_post_ra>
